<compile_context>
chip_gen: v7x
topology: tpu7x:2x2x1
jax: 0.10.0
libtpu: 0.0.40
codegen_flags: <defaults>
</compile_context>

<pallas_src>
import functools

import jax
import jax.numpy as jnp
from jax import lax
from jax.experimental import pallas as pl
from jax.experimental.pallas import tpu as pltpu

_LANE = 128
_SUBLANE = 8
_NEG_FILL = -1e30  # lane-mask fill: exp underflows to 0, (t - s) cancels to 0


def _round_up(x, m):
    return -(-x // m) * m


def _round_down(x, m):
    return (x // m) * m


def _cdiv(a, b):
    return -(-a // b)


def _kl_channel_kernel(s_ref, t_ref, out_ref,
                       m_s_ref, l_s_ref, m_t_ref, l_t_ref, b_ref,
                       *, inv_temp, rows, hw, tr, tl, mask_rows, mask_lanes):
    """Online (flash-softmax style) per-row KL over (row, lane) tiles.

    Per row, with u = s/T, v = t/T:
      KL = sum_j softmax(v)_j * (log softmax(v)_j - log softmax(u)_j)
         = B / l_t + (m_s - m_t)/T + log(l_s) - log(l_t)
    where m_s/m_t are running maxima of the raw logits, l_s/l_t running sums of
    exp((x - m)/T), and B the running sum of exp((t - m_t)/T) * (t - s)/T.
    """
    i = pl.program_id(0)          # row-block index  ("parallel")
    k = pl.program_id(1)          # lane-block index ("arbitrary" reduction)
    n_k = pl.num_programs(1)

    s = s_ref[...].astype(jnp.float32)
    t = t_ref[...].astype(jnp.float32)

    if mask_lanes:
        col = lax.broadcasted_iota(jnp.int32, s.shape, 1) + k * tl
        lane_ok = col < hw
        s = jnp.where(lane_ok, s, _NEG_FILL)
        t = jnp.where(lane_ok, t, _NEG_FILL)

    @pl.when(k == 0)
    def _():
        neg_inf = jnp.full((tr, 1), -jnp.inf, dtype=jnp.float32)
        zeros = jnp.zeros((tr, 1), dtype=jnp.float32)
        m_s_ref[...] = neg_inf
        m_t_ref[...] = neg_inf
        l_s_ref[...] = zeros
        l_t_ref[...] = zeros
        b_ref[...] = zeros

    m_s_old = m_s_ref[...]
    m_t_old = m_t_ref[...]
    m_s_new = jnp.maximum(m_s_old, jnp.max(s, axis=-1, keepdims=True))
    m_t_new = jnp.maximum(m_t_old, jnp.max(t, axis=-1, keepdims=True))

    # Rescale factors for the running accumulators; at k == 0 m_old = -inf so
    # alpha = exp(-inf) = 0 and the accumulators start from this tile alone.
    alpha_s = jnp.exp((m_s_old - m_s_new) * inv_temp)
    alpha_t = jnp.exp((m_t_old - m_t_new) * inv_temp)

    # Temperature applied AFTER max subtraction: no scaled full-tile temporaries
    # and no -inf from scaling the lane-fill value at tiny temperatures.
    e_s = jnp.exp((s - m_s_new) * inv_temp)
    e_t = jnp.exp((t - m_t_new) * inv_temp)
    diff = (t - s) * inv_temp         # fill lanes: (t - s) == 0 exactly

    l_s_ref[...] = alpha_s * l_s_ref[...] + jnp.sum(e_s, axis=-1, keepdims=True)
    l_t_ref[...] = alpha_t * l_t_ref[...] + jnp.sum(e_t, axis=-1, keepdims=True)
    b_ref[...] = alpha_t * b_ref[...] + jnp.sum(e_t * diff, axis=-1,
                                                keepdims=True)
    m_s_ref[...] = m_s_new
    m_t_ref[...] = m_t_new

    @pl.when(k == n_k - 1)
    def _():
        l_s = l_s_ref[...]
        l_t = l_t_ref[...]
        # Exact per-row division (approx EUP reciprocal drifts ~1e-4: too
        # coarse for an f32 loss, and this op is per-row, not on the HBM path).
        kl_rows = (b_ref[...] / l_t
                   + (m_s_ref[...] - m_t_ref[...]) * inv_temp
                   + jnp.log(l_s) - jnp.log(l_t))
        if mask_rows:
            row = lax.broadcasted_iota(jnp.int32, kl_rows.shape, 0) + i * tr
            kl_rows = jnp.where(row < rows, kl_rows, 0.0)
        # Lane-dense per-row-block partial; wrapper reads [:, 0, 0] and sums.
        out_ref[...] = jnp.full(out_ref.shape, jnp.sum(kl_rows),
                                dtype=jnp.float32)


def _vmem_budget():
    """(per-input tile budget, vmem_limit_bytes), generation-aware."""
    try:
        cap = pltpu.get_tpu_info().vmem_capacity_bytes
    except Exception:
        cap = 64 * 1024 * 1024            # conservative (v7x-safe) fallback
    if cap <= 64 * 1024 * 1024:           # v7x: 64 MiB VMEM per TensorCore
        return 2 * 1024 * 1024, 32 * 1024 * 1024
    return 4 * 1024 * 1024, 64 * 1024 * 1024   # v5e / v6e: 128 MiB physical


def _pick_tiles(rows, hw, tile_budget):
    """Choose (tr, tl, num_row_blocks, num_lane_blocks). f32 sizing (safe)."""
    rows8 = _round_up(rows, _SUBLANE)
    bytes_per_row = hw * 4
    if bytes_per_row * _SUBLANE <= tile_budget:
        # Whole rows fit in a block: tile rows only, lane dim = full H*W.
        tl = hw
        num_lane_blocks = 1
        tr_cap = max(_SUBLANE,
                     _round_down(tile_budget // bytes_per_row, _SUBLANE))
        # >= 2 row blocks whenever possible: the "parallel" axis is what shards
        # work across v7x's two TensorCores (harmless elsewhere).
        min_blocks = 2 if rows >= 2 * _SUBLANE else 1
        num_row_blocks = max(min_blocks, _cdiv(rows8, tr_cap))
        tr = _round_up(_cdiv(rows8, num_row_blocks), _SUBLANE)
        num_row_blocks = _cdiv(rows8, tr)
    else:
        # Huge H*W: tile the softmax (lane) axis too; online reduction in-kernel.
        tr = _SUBLANE
        tl = max(_LANE, _round_down(tile_budget // (tr * 4), _LANE))
        num_lane_blocks = _cdiv(hw, tl)
        if num_lane_blocks == 1:
            tl = hw
        num_row_blocks = _cdiv(rows8, tr)
    if num_row_blocks == 1:
        tr = rows                  # full-dim block: always legal, no garbage rows
    return tr, tl, num_row_blocks, num_lane_blocks


@functools.partial(jax.jit, static_argnames=("temperature", "tile_budget_bytes"))
def criterion_intra(preds_S, preds_T, temperature=1.0, tile_budget_bytes=None):
    """CriterionIntra(norm_type='channel', divergence='kl').forward."""
    # TODO(synk): bilinear F.interpolate path (mismatched spatial dims) and the
    # 'spatial' / 'channel_mean' / 'mse' module variants are not implemented.
    assert preds_S.shape == preds_T.shape, "shapes must match"
    n, c, h, w = preds_S.shape
    rows, hw = n * c, h * w

    # Free reshape: NCHW row-major -> (N*C, H*W); softmax axis on lanes.
    # No padding: unaligned shapes are masked inside the kernel.
    s = preds_S.reshape(rows, hw)
    t = preds_T.reshape(rows, hw)

    auto_budget, vmem_limit = _vmem_budget()
    tile_budget = tile_budget_bytes or auto_budget
    tr, tl, nrb, nlb = _pick_tiles(rows, hw, tile_budget)
    mask_rows = nrb * tr > rows
    mask_lanes = nlb * tl > hw

    kernel = functools.partial(
        _kl_channel_kernel,
        inv_temp=float(1.0 / temperature), rows=rows, hw=hw, tr=tr, tl=tl,
        mask_rows=mask_rows, mask_lanes=mask_lanes)

    itemsize = s.dtype.itemsize
    cost = pl.CostEstimate(
        flops=12 * rows * hw,
        transcendentals=2 * rows * hw,
        bytes_accessed=2 * rows * hw * itemsize + nrb * _SUBLANE * _LANE * 4)

    partials = pl.pallas_call(
        kernel,
        out_shape=jax.ShapeDtypeStruct((nrb, _SUBLANE, _LANE), jnp.float32),
        grid_spec=pltpu.PrefetchScalarGridSpec(
            num_scalar_prefetch=0,
            grid=(nrb, nlb),
            in_specs=[
                pl.BlockSpec((tr, tl), lambda i, k: (i, k)),
                pl.BlockSpec((tr, tl), lambda i, k: (i, k)),
            ],
            out_specs=pl.BlockSpec((1, _SUBLANE, _LANE), lambda i, k: (i, 0, 0)),
            scratch_shapes=[pltpu.VMEM((tr, 1), jnp.float32)] * 5,
        ),
        compiler_params=pltpu.CompilerParams(
            dimension_semantics=("parallel", "arbitrary"),
            vmem_limit_bytes=vmem_limit,
        ),
        cost_estimate=cost,
    )(s, t)

    loss = jnp.sum(partials[:, 0, 0]) / (n * c)
    return loss * (temperature ** 2)


def _reference(preds_S, preds_T, temperature=1.0):
    """Pure-JAX reference mirroring the PyTorch forward (f32 math)."""
    n, c, h, w = preds_S.shape
    s = (preds_S.astype(jnp.float32) / temperature).reshape(n, c, -1)
    t = (preds_T.astype(jnp.float32) / temperature).reshape(n, c, -1)
    log_p_s = jax.nn.log_softmax(s, axis=-1)
    p_t = jax.nn.softmax(t, axis=-1)
    log_p_t = jax.nn.log_softmax(t, axis=-1)
    loss = jnp.sum(p_t * (log_p_t - log_p_s))
    return loss / (n * c) * temperature ** 2


def _check(name, out, ref, rtol, atol):
    if not jnp.allclose(out, ref, rtol=rtol, atol=atol):
        raise AssertionError(f"mismatch ({name}): pallas={out} ref={ref}")


if __name__ == "__main__":
    key = jax.random.PRNGKey(0)
    k1, k2, k3, k4, k5, k6 = jax.random.split(key, 6)

    # Case 1: aligned NCHW conv-feature shape, T=2.
    s1 = jax.random.normal(k1, (2, 4, 16, 16), dtype=jnp.float32)
    t1 = jax.random.normal(k2, (2, 4, 16, 16), dtype=jnp.float32)
    out1 = criterion_intra(s1, t1, temperature=2.0)
    jax.block_until_ready(out1)
    _check("aligned", out1, _reference(s1, t1, 2.0), 2e-5, 1e-5)

    # Case 2: unaligned rows (n*c=6) and lanes (h*w=100) -> full-dim blocks.
    s2 = jax.random.normal(k3, (2, 3, 10, 10), dtype=jnp.float32)
    t2 = jax.random.normal(k4, (2, 3, 10, 10), dtype=jnp.float32)
    out2 = criterion_intra(s2, t2, temperature=1.0)
    jax.block_until_ready(out2)
    _check("unaligned", out2, _reference(s2, t2, 1.0), 2e-5, 1e-5)

    # Case 3: tiny forced tile budget -> exercises lane tiling + online
    # reduction + row/lane masking (rows=14, hw=156 -> grid (2, 2)).
    s3 = jax.random.normal(k5, (2, 7, 12, 13), dtype=jnp.float32)
    t3 = jax.random.normal(k6, (2, 7, 12, 13), dtype=jnp.float32)
    out3 = criterion_intra(s3, t3, temperature=0.5, tile_budget_bytes=4096)
    jax.block_until_ready(out3)
    _check("lane-tiled", out3, _reference(s3, t3, 0.5), 2e-5, 1e-5)

    # Case 4: bf16 inputs streamed natively (kernel upcasts to f32).
    s4 = s1.astype(jnp.bfloat16)
    t4 = t1.astype(jnp.bfloat16)
    out4 = criterion_intra(s4, t4, temperature=2.0)
    jax.block_until_ready(out4)
    _check("bf16", out4, _reference(s4, t4, 2.0), 1e-4, 1e-5)

    print("KERNEL_OK")
</pallas_src>

<mosaic_0001>
module attributes {stable_mosaic.version = 11 : i64} {
  func.func @_kl_channel_kernel(%arg0: i32, %arg1: i32, %arg2: memref<8x256xf32, #tpu.memory_space<vmem>>, %arg3: memref<8x256xf32, #tpu.memory_space<vmem>>, %arg4: memref<1x8x128xf32, #tpu.memory_space<vmem>>, %arg5: memref<8x1xf32, #tpu.memory_space<vmem>>, %arg6: memref<8x1xf32, #tpu.memory_space<vmem>>, %arg7: memref<8x1xf32, #tpu.memory_space<vmem>>, %arg8: memref<8x1xf32, #tpu.memory_space<vmem>>, %arg9: memref<8x1xf32, #tpu.memory_space<vmem>>) attributes {dimension_semantics = [#tpu.dimension_semantics<parallel>, #tpu.dimension_semantics<arbitrary>], iteration_bounds = array<i64: 1, 1>, scalar_prefetch = 0 : i64, scratch_operands = 5 : i64, tpu.core_type = #tpu.core_type<tc>, window_params = [{transform_indices = @transform_0, window_bounds = array<i64: 8, 256>}, {transform_indices = @transform_1, window_bounds = array<i64: 8, 256>}, {transform_indices = @transform_2, window_bounds = array<i64: 1, 8, 128>}]} {
    %c0 = arith.constant 0 : index
    %c0_0 = arith.constant 0 : index
    %0 = vector.load %arg2[%c0, %c0_0] : memref<8x256xf32, #tpu.memory_space<vmem>>, vector<8x256xf32>
    %c0_1 = arith.constant 0 : index
    %c0_2 = arith.constant 0 : index
    %1 = vector.load %arg3[%c0_1, %c0_2] : memref<8x256xf32, #tpu.memory_space<vmem>>, vector<8x256xf32>
    %c0_i32 = arith.constant 0 : i32
    %2 = arith.cmpi eq, %arg1, %c0_i32 : i32
    %3 = arith.extui %2 : i1 to i32
    %c0_i32_3 = arith.constant 0 : i32
    %4 = arith.cmpi ne, %3, %c0_i32_3 : i32
    scf.if %4 {
      %cst_35 = arith.constant 0xFF800000 : f32
      %58 = vector.broadcast %cst_35 : f32 to vector<8x1xf32>
      %cst_36 = arith.constant 0.000000e+00 : f32
      %59 = vector.broadcast %cst_36 : f32 to vector<8x1xf32>
      %c0_37 = arith.constant 0 : index
      %c0_38 = arith.constant 0 : index
      %60 = vector.load %arg5[%c0_37, %c0_38] : memref<8x1xf32, #tpu.memory_space<vmem>>, vector<8x1xf32>
      tpu.vector_store %arg5[%c0_37, %c0_38], %58 {strides = array<i32>} : memref<8x1xf32, #tpu.memory_space<vmem>>, vector<8x1xf32>,
      %c0_39 = arith.constant 0 : index
      %c0_40 = arith.constant 0 : index
      %61 = vector.load %arg7[%c0_39, %c0_40] : memref<8x1xf32, #tpu.memory_space<vmem>>, vector<8x1xf32>
      tpu.vector_store %arg7[%c0_39, %c0_40], %58 {strides = array<i32>} : memref<8x1xf32, #tpu.memory_space<vmem>>, vector<8x1xf32>,
      %c0_41 = arith.constant 0 : index
      %c0_42 = arith.constant 0 : index
      %62 = vector.load %arg6[%c0_41, %c0_42] : memref<8x1xf32, #tpu.memory_space<vmem>>, vector<8x1xf32>
      tpu.vector_store %arg6[%c0_41, %c0_42], %59 {strides = array<i32>} : memref<8x1xf32, #tpu.memory_space<vmem>>, vector<8x1xf32>,
      %c0_43 = arith.constant 0 : index
      %c0_44 = arith.constant 0 : index
      %63 = vector.load %arg8[%c0_43, %c0_44] : memref<8x1xf32, #tpu.memory_space<vmem>>, vector<8x1xf32>
      tpu.vector_store %arg8[%c0_43, %c0_44], %59 {strides = array<i32>} : memref<8x1xf32, #tpu.memory_space<vmem>>, vector<8x1xf32>,
      %c0_45 = arith.constant 0 : index
      %c0_46 = arith.constant 0 : index
      %64 = vector.load %arg9[%c0_45, %c0_46] : memref<8x1xf32, #tpu.memory_space<vmem>>, vector<8x1xf32>
      tpu.vector_store %arg9[%c0_45, %c0_46], %59 {strides = array<i32>} : memref<8x1xf32, #tpu.memory_space<vmem>>, vector<8x1xf32>,
    } else {
    }
    %c0_4 = arith.constant 0 : index
    %c0_5 = arith.constant 0 : index
    %5 = vector.load %arg5[%c0_4, %c0_5] : memref<8x1xf32, #tpu.memory_space<vmem>>, vector<8x1xf32>
    %c0_6 = arith.constant 0 : index
    %c0_7 = arith.constant 0 : index
    %6 = vector.load %arg7[%c0_6, %c0_7] : memref<8x1xf32, #tpu.memory_space<vmem>>, vector<8x1xf32>
    %cst = arith.constant dense<0xFF800000> : vector<8xf32>
    %7 = vector.multi_reduction <maximumf>, %0, %cst [1] : vector<8x256xf32> to vector<8xf32>
    %8 = vector.shape_cast %7 : vector<8xf32> to vector<8x1xf32>
    %9 = arith.maximumf %5, %8 : vector<8x1xf32>
    %cst_8 = arith.constant dense<0xFF800000> : vector<8xf32>
    %10 = vector.multi_reduction <maximumf>, %1, %cst_8 [1] : vector<8x256xf32> to vector<8xf32>
    %11 = vector.shape_cast %10 : vector<8xf32> to vector<8x1xf32>
    %12 = arith.maximumf %6, %11 : vector<8x1xf32>
    %13 = arith.subf %5, %9 : vector<8x1xf32>
    %cst_9 = arith.constant 5.000000e-01 : f32
    %14 = vector.broadcast %cst_9 : f32 to vector<8x1xf32>
    %15 = arith.mulf %13, %14 : vector<8x1xf32>
    %16 = math.exp %15 : vector<8x1xf32>
    %17 = arith.subf %6, %12 : vector<8x1xf32>
    %cst_10 = arith.constant 5.000000e-01 : f32
    %18 = vector.broadcast %cst_10 : f32 to vector<8x1xf32>
    %19 = arith.mulf %17, %18 : vector<8x1xf32>
    %20 = math.exp %19 : vector<8x1xf32>
    %21 = vector.broadcast %9 : vector<8x1xf32> to vector<8x256xf32>
    %22 = arith.subf %0, %21 : vector<8x256xf32>
    %cst_11 = arith.constant 5.000000e-01 : f32
    %23 = vector.broadcast %cst_11 : f32 to vector<8x256xf32>
    %24 = arith.mulf %22, %23 : vector<8x256xf32>
    %25 = math.exp %24 : vector<8x256xf32>
    %26 = vector.broadcast %12 : vector<8x1xf32> to vector<8x256xf32>
    %27 = arith.subf %1, %26 : vector<8x256xf32>
    %cst_12 = arith.constant 5.000000e-01 : f32
    %28 = vector.broadcast %cst_12 : f32 to vector<8x256xf32>
    %29 = arith.mulf %27, %28 : vector<8x256xf32>
    %30 = math.exp %29 : vector<8x256xf32>
    %31 = arith.subf %1, %0 : vector<8x256xf32>
    %cst_13 = arith.constant 5.000000e-01 : f32
    %32 = vector.broadcast %cst_13 : f32 to vector<8x256xf32>
    %33 = arith.mulf %31, %32 : vector<8x256xf32>
    %c0_14 = arith.constant 0 : index
    %c0_15 = arith.constant 0 : index
    %34 = vector.load %arg6[%c0_14, %c0_15] : memref<8x1xf32, #tpu.memory_space<vmem>>, vector<8x1xf32>
    %35 = arith.mulf %16, %34 : vector<8x1xf32>
    %cst_16 = arith.constant dense<0.000000e+00> : vector<8xf32>
    %36 = vector.multi_reduction <add>, %25, %cst_16 [1] : vector<8x256xf32> to vector<8xf32>
    %37 = vector.shape_cast %36 : vector<8xf32> to vector<8x1xf32>
    %38 = arith.addf %35, %37 : vector<8x1xf32>
    %c0_17 = arith.constant 0 : index
    %c0_18 = arith.constant 0 : index
    %39 = vector.load %arg6[%c0_17, %c0_18] : memref<8x1xf32, #tpu.memory_space<vmem>>, vector<8x1xf32>
    tpu.vector_store %arg6[%c0_17, %c0_18], %38 {strides = array<i32>} : memref<8x1xf32, #tpu.memory_space<vmem>>, vector<8x1xf32>,
    %c0_19 = arith.constant 0 : index
    %c0_20 = arith.constant 0 : index
    %40 = vector.load %arg8[%c0_19, %c0_20] : memref<8x1xf32, #tpu.memory_space<vmem>>, vector<8x1xf32>
    %41 = arith.mulf %20, %40 : vector<8x1xf32>
    %cst_21 = arith.constant dense<0.000000e+00> : vector<8xf32>
    %42 = vector.multi_reduction <add>, %30, %cst_21 [1] : vector<8x256xf32> to vector<8xf32>
    %43 = vector.shape_cast %42 : vector<8xf32> to vector<8x1xf32>
    %44 = arith.addf %41, %43 : vector<8x1xf32>
    %c0_22 = arith.constant 0 : index
    %c0_23 = arith.constant 0 : index
    %45 = vector.load %arg8[%c0_22, %c0_23] : memref<8x1xf32, #tpu.memory_space<vmem>>, vector<8x1xf32>
    tpu.vector_store %arg8[%c0_22, %c0_23], %44 {strides = array<i32>} : memref<8x1xf32, #tpu.memory_space<vmem>>, vector<8x1xf32>,
    %c0_24 = arith.constant 0 : index
    %c0_25 = arith.constant 0 : index
    %46 = vector.load %arg9[%c0_24, %c0_25] : memref<8x1xf32, #tpu.memory_space<vmem>>, vector<8x1xf32>
    %47 = arith.mulf %20, %46 : vector<8x1xf32>
    %48 = arith.mulf %30, %33 : vector<8x256xf32>
    %cst_26 = arith.constant dense<0.000000e+00> : vector<8xf32>
    %49 = vector.multi_reduction <add>, %48, %cst_26 [1] : vector<8x256xf32> to vector<8xf32>
    %50 = vector.shape_cast %49 : vector<8xf32> to vector<8x1xf32>
    %51 = arith.addf %47, %50 : vector<8x1xf32>
    %c0_27 = arith.constant 0 : index
    %c0_28 = arith.constant 0 : index
    %52 = vector.load %arg9[%c0_27, %c0_28] : memref<8x1xf32, #tpu.memory_space<vmem>>, vector<8x1xf32>
    tpu.vector_store %arg9[%c0_27, %c0_28], %51 {strides = array<i32>} : memref<8x1xf32, #tpu.memory_space<vmem>>, vector<8x1xf32>,
    %c0_29 = arith.constant 0 : index
    %c0_30 = arith.constant 0 : index
    %53 = vector.load %arg5[%c0_29, %c0_30] : memref<8x1xf32, #tpu.memory_space<vmem>>, vector<8x1xf32>
    tpu.vector_store %arg5[%c0_29, %c0_30], %9 {strides = array<i32>} : memref<8x1xf32, #tpu.memory_space<vmem>>, vector<8x1xf32>,
    %c0_31 = arith.constant 0 : index
    %c0_32 = arith.constant 0 : index
    %54 = vector.load %arg7[%c0_31, %c0_32] : memref<8x1xf32, #tpu.memory_space<vmem>>, vector<8x1xf32>
    tpu.vector_store %arg7[%c0_31, %c0_32], %12 {strides = array<i32>} : memref<8x1xf32, #tpu.memory_space<vmem>>, vector<8x1xf32>,
    %c0_i32_33 = arith.constant 0 : i32
    %55 = arith.cmpi eq, %arg1, %c0_i32_33 : i32
    %56 = arith.extui %55 : i1 to i32
    %c0_i32_34 = arith.constant 0 : i32
    %57 = arith.cmpi ne, %56, %c0_i32_34 : i32
    scf.if %57 {
      %c0_35 = arith.constant 0 : index
      %c0_36 = arith.constant 0 : index
      %58 = vector.load %arg6[%c0_35, %c0_36] : memref<8x1xf32, #tpu.memory_space<vmem>>, vector<8x1xf32>
      %c0_37 = arith.constant 0 : index
      %c0_38 = arith.constant 0 : index
      %59 = vector.load %arg8[%c0_37, %c0_38] : memref<8x1xf32, #tpu.memory_space<vmem>>, vector<8x1xf32>
      %c0_39 = arith.constant 0 : index
      %c0_40 = arith.constant 0 : index
      %60 = vector.load %arg9[%c0_39, %c0_40] : memref<8x1xf32, #tpu.memory_space<vmem>>, vector<8x1xf32>
      %61 = arith.divf %60, %59 : vector<8x1xf32>
      %c0_41 = arith.constant 0 : index
      %c0_42 = arith.constant 0 : index
      %62 = vector.load %arg5[%c0_41, %c0_42] : memref<8x1xf32, #tpu.memory_space<vmem>>, vector<8x1xf32>
      %c0_43 = arith.constant 0 : index
      %c0_44 = arith.constant 0 : index
      %63 = vector.load %arg7[%c0_43, %c0_44] : memref<8x1xf32, #tpu.memory_space<vmem>>, vector<8x1xf32>
      %64 = arith.subf %62, %63 : vector<8x1xf32>
      %cst_45 = arith.constant 5.000000e-01 : f32
      %65 = vector.broadcast %cst_45 : f32 to vector<8x1xf32>
      %66 = arith.mulf %64, %65 : vector<8x1xf32>
      %67 = arith.addf %61, %66 : vector<8x1xf32>
      %68 = math.log %58 : vector<8x1xf32>
      %69 = arith.addf %67, %68 : vector<8x1xf32>
      %70 = math.log %59 : vector<8x1xf32>
      %71 = arith.subf %69, %70 : vector<8x1xf32>
      %72 = vector.shape_cast %71 : vector<8x1xf32> to vector<1x8x1xf32>
      %cst_46 = arith.constant dense<0.000000e+00> : vector<1xf32>
      %73 = vector.multi_reduction <add>, %72, %cst_46 [1, 2] : vector<1x8x1xf32> to vector<1xf32>
      %74 = vector.shape_cast %73 : vector<1xf32> to vector<1x1x1xf32>
      %75 = vector.extract %74[0, 0, 0] : f32 from vector<1x1x1xf32>
      %76 = vector.broadcast %75 : f32 to vector<1x8x128xf32>
      %c0_47 = arith.constant 0 : index
      %c0_48 = arith.constant 0 : index
      %c0_49 = arith.constant 0 : index
      %77 = vector.load %arg4[%c0_47, %c0_48, %c0_49] : memref<1x8x128xf32, #tpu.memory_space<vmem>>, vector<1x8x128xf32>
      tpu.vector_store %arg4[%c0_47, %c0_48, %c0_49], %76 {strides = array<i32>} : memref<1x8x128xf32, #tpu.memory_space<vmem>>, vector<1x8x128xf32>,
    } else {
    }
    return
  }
  func.func @transform_0(%arg0: i32, %arg1: i32) -> (i32, i32) {
    %c0_i32 = arith.constant 0 : i32
    return %arg0, %arg1 : i32, i32
  }
  func.func @transform_1(%arg0: i32, %arg1: i32) -> (i32, i32) {
    %c0_i32 = arith.constant 0 : i32
    return %arg0, %arg1 : i32, i32
  }
  func.func @transform_2(%arg0: i32, %arg1: i32) -> (i32, i32, i32) {
    %c0_i32 = arith.constant 0 : i32
    %c0_i32_0 = arith.constant 0 : i32
    %c0_i32_1 = arith.constant 0 : i32
    return %arg0, %c0_i32, %c0_i32_0 : i32, i32, i32
  }
}

</mosaic_0001>

<bundles_post_ra>
// kernel: criterion_intra.1
= control target key start
LH: loop header
LB: loop body
LE: loop exit
PB: predicated region body
PF: predicated region fallthrough
CT: control target
= control target key end

     0   :  { %vm19_vm0 = vcmask 7168   ;;  %v159_v3 = vmov -inf   ;;  %v160_v7 = vmov 0   ;;  %v161_v8 = vmov 0.0   ;;  %s203_s1 = inlined_call_operand.vmem [shape: f32[8,256], index: 1, kind: input, shape index: {}]   ;;  %s204_s0 = inlined_call_operand.vmem [shape: f32[8,256], index: 0, kind: input, shape index: {}]   ;;  %s205_s2 = inlined_call_operand.vmem [shape: f32[1,8,128], index: 2, kind: output, shape index: {}]  }
   0x1   :  { %v13_v0 = vld [vmem:[%s203_s1] sm:$0xff]  ;;  %v14_v1 = vld [vmem:[%s203_s1 + $0x8] sm:$0xff]  ;;  %21 = vst.msk [vmem:[#allocation4] sm:$0xff] %vm19_vm0, %v159_v3  ;;  %20 = vst.msk [vmem:[#allocation2] sm:$0xff] %vm19_vm0, %v159_v3  ;;  %139 = vset.pattern.permute.xlu1 %v160_v7  ;;  %140 = vset.pattern.permute.xlu0 %v160_v7 }
   0x2   :  { %v11_v2 = vld [vmem:[%s204_s0] sm:$0xff]  ;;  %v31_v4 = vmax.f32 %v13_v0, %v14_v1  ;;  %v12_v5 = vld [vmem:[%s204_s0 + $0x8] sm:$0xff]  ;;  %23 = vst.msk [vmem:[#allocation5] sm:$0xff] %vm19_vm0, %v161_v8  ;;  %22 = vst.msk [vmem:[#allocation3] sm:$0xff] %vm19_vm0, %v161_v8 }
   0x3   :  { %v27_v6 = vmax.f32 %v11_v2, %v12_v5  ;;  %24 = vst.msk [vmem:[#allocation6] sm:$0xff] %vm19_vm0, %v161_v8  ;;  %v69_v31 = vsub.f32 %v13_v0, %v11_v2  ;;  %v70_v32 = vsub.f32 %v14_v1, %v12_v5 }
   0x4   :  { %32 = vmax.xlane.f32.xlu0 %v31_v4 }
   0x5   :  { %v71_v33 = vmul.f32 0.5, %v69_v31  ;;  %v72_v34 = vmul.f32 0.5, %v70_v32 }
   0x8   :  { %28 = vmax.xlane.f32.xlu0 %v27_v6  ;;  %v26_v9 = vld [vmem:[#allocation4] sm:$0xff]  ;;  %v25_v12 = vld [vmem:[#allocation2] sm:$0xff] }
   0x9   :  { %v81_v49 = vld [vmem:[#allocation5] sm:$0xff]  ;;  %v73_v53 = vld [vmem:[#allocation3] sm:$0xff] }
   0xa   :  { %v88_v54 = vld [vmem:[#allocation6] sm:$0xff] }
  0x91   :  { %v33_v10 = vpop.xlane.xlu0 %32 }
  0x92   :  { %v34_v11 = vmax.f32 %v26_v9, %v33_v10 }
  0x94   :  { %v39_v13 = vsub.f32 %v26_v9, %v34_v11  ;;  %98 = vst.msk [vmem:[#allocation4] sm:$0xff] %vm19_vm0, %v34_v11  ;;  %58 = vperm.xlu1 %139, %v34_v11  }
  0x95   :  { %v29_v14 = vpop.xlane.xlu0 %28 }
  0x96   :  { %v30_v15 = vmax.f32 %v25_v12, %v29_v14  ;;  %v40_v44 = vmul.f32 0.5, %v39_v13 }
  0x98   :  { %v35_v16 = vsub.f32 %v25_v12, %v30_v15  ;;  %97 = vst.msk [vmem:[#allocation2] sm:$0xff] %vm19_vm0, %v30_v15  ;;  %45 = vperm.xlu1 %139, %v30_v15   ;;  %v41_v45 = vmul.f32 1.442695, %v40_v44 }
  0x9a   :  { %v36_v46 = vmul.f32 0.5, %v35_v16 }
  0x9c   :  { %v37_v47 = vmul.f32 1.442695, %v36_v46 }
 0x113   :  { %v59_v17 = vpop.permute.xlu1 %58 }
 0x114   :  { %v61_v18 = vsub.f32 %v13_v0, %v59_v17  ;;  %v62_v19 = vsub.f32 %v14_v1, %v59_v17  ;;  %v107_v0 = vld [vmem:[#allocation2] sm:$0xff]  ;;  %v108_v1 = vld [vmem:[#allocation4] sm:$0xff] }
 0x116   :  { %v63_v20 = vmul.f32 0.5, %v61_v18  ;;  %v64_v21 = vmul.f32 0.5, %v62_v19 }
 0x117   :  { %v46_v22 = vpop.permute.xlu1 %45 }
 0x118   :  { %v65_v23 = vmul.f32 1.442695, %v63_v20  ;;  %v67_v24 = vmul.f32 1.442695, %v64_v21  ;;  %v48_v25 = vsub.f32 %v11_v2, %v46_v22  ;;  %v49_v26 = vsub.f32 %v12_v5, %v46_v22 }
 0x119   :  { %v109_v2 = vsub.f32 %v107_v0, %v108_v1 }
 0x11a   :  { %141 = vpow2.f32 %v65_v23  ;;  %v50_v27 = vmul.f32 0.5, %v48_v25  ;;  %v51_v28 = vmul.f32 0.5, %v49_v26 }
 0x11b   :  { %143 = vpow2.f32 %v67_v24  ;;  %v110_v7 = vmul.f32 0.5, %v109_v2 }
 0x11c   :  { %v52_v29 = vmul.f32 1.442695, %v50_v27  ;;  %v54_v30 = vmul.f32 1.442695, %v51_v28 }
 0x11e   :  { %145 = vpow2.f32 %v52_v29 }
 0x11f   :  { %147 = vpow2.f32 %v54_v30 }
 0x120   :  { %149 = vpow2.f32 %v41_v45 }
 0x121   :  { %151 = vpow2.f32 %v37_v47 }
 0x124   :  { %v142_v35 = vpop.eup %141 }
 0x125   :  { %v144_v36 = vpop.eup %143  ;;  %v90_v38 = vmul.f32 %v142_v35, %v71_v33 }
 0x126   :  { %v83_v37 = vadd.f32 %v144_v36, %v142_v35  ;;  %v91_v39 = vmul.f32 %v144_v36, %v72_v34 }
 0x128   :  { %v146_v40 = vpop.eup %145  ;;  %84 = vadd.xlane.f32.xlu0 %v83_v37  ;;  %v92_v42 = vadd.f32 %v91_v39, %v90_v38 }
 0x129   :  { %v148_v41 = vpop.eup %147 }
 0x12a   :  { %v75_v43 = vadd.f32 %v148_v41, %v146_v40  ;;  %v150_v48 = vpop.eup %149 }
 0x12b   :  { %v82_v50 = vmul.f32 %v150_v48, %v81_v49  ;;  %v152_v51 = vpop.eup %151  ;;  %v89_v57 = vmul.f32 %v150_v48, %v88_v54 }
 0x12c   :  { %93 = vadd.xlane.f32.xlu0 %v92_v42  ;;  %76 = vadd.xlane.f32.xlu1 %v75_v43  ;;  %v74_v56 = vmul.f32 %v152_v51, %v73_v53 }
 0x1b5   :  { %v85_v52 = vpop.xlane.xlu0 %84 }
 0x1b6   :  { %v86_v55 = vadd.f32 %v85_v52, %v82_v50 }
 0x1b8   :  { %87 = vst.msk [vmem:[#allocation5] sm:$0xff] %vm19_vm0, %v86_v55 }
 0x1b9   :  { %v77_v58 = vpop.xlane.xlu1 %76  ;;  %v94_v59 = vpop.xlane.xlu0 %93 }
 0x1ba   :  { %v78_v60 = vadd.f32 %v77_v58, %v74_v56  ;;  %v95_v61 = vadd.f32 %v94_v59, %v89_v57 }
 0x1bc   :  { %80 = vst.msk [vmem:[#allocation3] sm:$0xff] %vm19_vm0, %v78_v60  ;;  %96 = vst.msk [vmem:[#allocation6] sm:$0xff] %vm19_vm0, %v95_v61 }
 0x1bf   :  { %v103_v62 = vld [vmem:[#allocation5] sm:$0xff] }
 0x1c0   :  { %153 = vrcp.f32 %v103_v62 }
 0x1c1   :  { %155 = vlog2.f32 %v103_v62 }
 0x1c3   :  { %v102_v63 = vld [vmem:[#allocation3] sm:$0xff]  ;;  %v104_v4 = vld [vmem:[#allocation6] sm:$0xff] }
 0x1c4   :  { %157 = vlog2.f32 %v102_v63 }
 0x1ca   :  { %v154_v3 = vpop.eup %153 }
 0x1cb   :  { %v106_v5 = vmul.f32 %v154_v3, %v104_v4  ;;  %v156_v6 = vpop.eup %155 }
 0x1cc   :  { %v116_v12 = vmul.f32 0.6931472, %v156_v6 }
 0x1cd   :  { %v111_v9 = vadd.f32 %v110_v7, %v106_v5 }
 0x1ce   :  { %v158_v8 = vpop.eup %157 }
 0x1cf   :  { %v113_v10 = vmul.f32 0.6931472, %v158_v8 }
 0x1d1   :  { %v114_v11 = vadd.f32 %v113_v10, %v111_v9 }
 0x1d3   :  { %v117_v13 = vsub.f32 %v114_v11, %v116_v12 }
 0x1d5   :  { %v118_v14 = vsel %vm19_vm0, %v117_v13, 0.0 }
 0x1d6   :  { %119 = vadd.xlane.f32.xlu0 %v118_v14 }
 0x263   :  { %v120_v15 = vpop.xlane.xlu0 %119 }
 0x264   :  { %v121_v16 = vrot.slane %v120_v15, 4 }
 0x266   :  { %v122_v17 = vadd.f32 %v121_v16, %v120_v15 }
 0x268   :  { %v123_v18 = vrot.slane %v122_v17, 2 }
 0x26a   :  { %v124_v19 = vadd.f32 %v123_v18, %v122_v17 }
 0x26c   :  { %v125_v20 = vrot.slane %v124_v19, 1 }
 0x26e   :  { %v126_v21 = vadd.f32 %v125_v20, %v124_v19 }
 0x270   :  { %134 = vpush %v126_v21 }
 0x2a1   :  { %s135_s0 = spop %134 }
 0x2a2   :  { %v128_v22 = vstv %s135_s0 }
 0x2a3   :  { %129 = vst [vmem:[%s205_s2] sm:$0xff] %v128_v22 }

</bundles_post_ra>
